<compile_context>
chip_gen: v5e
topology: v5e:2x2
jax: 0.10.0
libtpu: 0.0.40
codegen_flags: <defaults>
</compile_context>

<pallas_src>
import math

import jax
import jax.numpy as jnp
import numpy as np
from jax.experimental import pallas as pl
from jax.experimental.pallas import tpu as pltpu


# -----------------------------------------------------------------------------
# Host-side construction of the 1-D interpolation operators (PyTorch semantics)
# -----------------------------------------------------------------------------
def _src_index_weights(in_size, out_size, mode, align_corners):
    """Per-output-pixel (i0, i1, lambda), matching PyTorch's upsample kernels."""
    out_idx = np.arange(out_size, dtype=np.float64)
    if mode == "nearest":
        src = np.floor(out_idx * (in_size / out_size)).astype(np.int64)
        src = np.clip(src, 0, in_size - 1)
        return src, src, np.zeros(out_size, np.float64)
    # linear / bilinear
    if align_corners:
        scale = 0.0 if out_size <= 1 else (in_size - 1) / (out_size - 1)
        src = out_idx * scale
    else:
        src = (out_idx + 0.5) * (in_size / out_size) - 0.5
        src = np.maximum(src, 0.0)
    i0 = np.clip(np.floor(src).astype(np.int64), 0, in_size - 1)
    i1 = np.minimum(i0 + 1, in_size - 1)
    lam = src - i0
    return i0, i1, lam


def _interp_matrix(in_size, out_size, mode, align_corners):
    """Dense (out_size, in_size) operator A so that  y = A @ x  along one axis."""
    i0, i1, lam = _src_index_weights(in_size, out_size, mode, align_corners)
    rows = np.arange(out_size)
    a = np.zeros((out_size, in_size), np.float64)
    a[rows, i0] += 1.0 - lam
    a[rows, i1] += lam
    return a


# -----------------------------------------------------------------------------
# Block planning (generation-aware VMEM budget)
# -----------------------------------------------------------------------------
def _vmem_capacity_bytes():
    try:
        info = pltpu.get_tpu_info()
        cap = getattr(info, "vmem_capacity_bytes", None)
        if cap:
            return int(cap)
    except Exception:
        pass
    return 64 << 20  # conservative fallback (v7x physical per-TC VMEM)


def _plan_blocks(nc, h, w, h_out, w_out, x_itemsize, a_itemsize):
    """Pick the channel-block size cb, padding, and a vmem_limit_bytes."""
    per_cb = (2 * h * w * x_itemsize              # x block (double-buffered)
              + 2 * h_out * w_out * x_itemsize    # out block (double-buffered)
              + h * w_out * 4                     # f32 intermediate t
              + h_out * w_out * 4                 # f32 result y
              + h_out * h * a_itemsize)           # broadcast A_h copy
    fixed = 2 * (h_out * h + w * w_out) * a_itemsize  # resident operators
    vmem_cap = _vmem_capacity_bytes()
    # Safe across v5e/v6e (128 MiB) and v7x (64 MiB); leaves headroom.
    vmem_limit = int(min(max(vmem_cap - (16 << 20), 16 << 20), 48 << 20))
    block_budget = min(vmem_limit, 28 << 20) - fixed - (4 << 20)
    cap = max(1, block_budget // max(per_cb, 1))
    cap = int(min(cap, nc, 256))
    if nc >= 2:
        # Keep >= 2 grid steps so the "parallel" axis can feed both TCs (v7x).
        cap = max(1, min(cap, pl.cdiv(nc, 2)))
    # Prefer a divisor of nc (no padding) if one is reasonably close to cap.
    best_div = 1
    for d in range(1, cap + 1):
        if nc % d == 0:
            best_div = d
    cb = best_div if best_div * 2 >= cap else cap
    pad = (-nc) % cb
    return cb, pad, vmem_limit


# -----------------------------------------------------------------------------
# Pallas kernel
# -----------------------------------------------------------------------------
def _make_interp_kernel(cb, h, w, h_out, w_out, compute_dtype, precision):
    def kernel(ah_ref, awt_ref, x_ref, o_ref):
        ah = ah_ref[...]            # (h_out, h)  resident across all grid steps
        awt = awt_ref[...]          # (w, w_out)  resident across all grid steps
        x = x_ref[...]              # (cb, h, w)  native dtype (no f32 upcast)

        # ---- contract W first: lane-dense (.., W_out) intermediate ----------
        if h % 8 == 0:
            # Free reshape (sublane-aligned): one big (cb*h, w) @ (w, w_out).
            t = jnp.dot(x.reshape(cb * h, w), awt,
                        preferred_element_type=jnp.float32,
                        precision=precision)
            t = t.reshape(cb, h, w_out)
        else:
            awt_b = jnp.broadcast_to(awt[None], (cb, w, w_out))
            t = jax.lax.dot_general(
                x, awt_b, (((2,), (1,)), ((0,), (0,))),
                preferred_element_type=jnp.float32, precision=precision)
        t = t.astype(compute_dtype)

        # ---- contract H: one batched matmul, output (cb, h_out, w_out) ------
        ah_b = jnp.broadcast_to(ah[None], (cb, h_out, h))
        y = jax.lax.dot_general(
            ah_b, t, (((2,), (1,)), ((0,), (0,))),
            preferred_element_type=jnp.float32, precision=precision)

        # Single whole-block, lane-dense store.
        o_ref[...] = y.astype(o_ref.dtype)

    return kernel


# -----------------------------------------------------------------------------
# Public wrapper (forward-pass equivalent of the Interpolate module)
# -----------------------------------------------------------------------------
def interpolate(x, scale_factor, mode="bilinear", align_corners=False):
    """Pallas TPU equivalent of
       F.interpolate(x, scale_factor=..., mode=..., align_corners=...)
    for 4-D NCHW inputs with mode in {'bilinear', 'nearest'}."""
    if x.ndim != 4:
        raise ValueError("expected 4-D NCHW input")
    if mode not in ("bilinear", "nearest"):
        # TODO(synk): bicubic / area / trilinear modes are not implemented.
        raise NotImplementedError(mode)
    if isinstance(scale_factor, (tuple, list)):
        sh, sw = scale_factor
    else:
        sh = sw = scale_factor

    n, c, h, w = x.shape
    h_out = int(math.floor(h * sh))
    w_out = int(math.floor(w * sw))

    x_dtype = jnp.dtype(x.dtype)
    if x_dtype in (jnp.dtype(jnp.bfloat16), jnp.dtype(jnp.float16)):
        # Native reduced-precision MXU path; operators in the same dtype.
        compute_dtype = x_dtype
        precision = jax.lax.Precision.DEFAULT
    else:
        # f32: multi-pass MXU so nearest/bilinear match the reference closely.
        compute_dtype = jnp.float32
        precision = jax.lax.Precision.HIGHEST

    ah = jnp.asarray(_interp_matrix(h, h_out, mode, align_corners),
                     dtype=compute_dtype)                       # (H_out, H)
    awt = jnp.asarray(_interp_matrix(w, w_out, mode, align_corners).T,
                      dtype=compute_dtype)                      # (W, W_out)

    nc = n * c
    xp = x.reshape(nc, h, w)

    cb, pad, vmem_limit = _plan_blocks(
        nc, h, w, h_out, w_out,
        x_itemsize=x_dtype.itemsize,
        a_itemsize=jnp.dtype(compute_dtype).itemsize)
    if pad:
        xp = jnp.pad(xp, ((0, pad), (0, 0), (0, 0)))
    nc_p = nc + pad
    grid = (nc_p // cb,)

    flops = 2 * nc_p * (h * w * w_out + h * h_out * w_out)
    bytes_accessed = (nc_p * (h * w + h_out * w_out) * x_dtype.itemsize
                      + int(ah.size + awt.size) * jnp.dtype(compute_dtype).itemsize)

    out = pl.pallas_call(
        _make_interp_kernel(cb, h, w, h_out, w_out, compute_dtype, precision),
        out_shape=jax.ShapeDtypeStruct((nc_p, h_out, w_out), x.dtype),
        grid=grid,
        in_specs=[
            pl.BlockSpec((h_out, h), lambda i: (0, 0)),       # A_h   (fetched once)
            pl.BlockSpec((w, w_out), lambda i: (0, 0)),       # A_w^T (fetched once)
            pl.BlockSpec((cb, h, w), lambda i: (i, 0, 0)),    # channel block of x
        ],
        out_specs=pl.BlockSpec((cb, h_out, w_out), lambda i: (i, 0, 0)),
        compiler_params=pltpu.CompilerParams(
            dimension_semantics=("parallel",),
            vmem_limit_bytes=vmem_limit),
        cost_estimate=pl.CostEstimate(
            flops=flops, transcendentals=0, bytes_accessed=bytes_accessed),
    )(ah, awt, xp)

    if pad:
        out = out[:nc]
    return out.reshape(n, c, h_out, w_out)


class Interpolate:
    """Thin module-style wrapper mirroring the PyTorch spec."""

    def __init__(self, scale_factor, mode, align_corners=False):
        self.scale_factor = scale_factor
        self.mode = mode
        self.align_corners = align_corners

    def __call__(self, x):
        return interpolate(x, self.scale_factor, self.mode, self.align_corners)

    def __repr__(self):
        return (f"Interpolate(scale_factor={self.scale_factor}, "
                f"mode={self.mode}, align_corners={self.align_corners})")


# -----------------------------------------------------------------------------
# Pure-JAX reference (gather + lerp, same PyTorch index/weight arithmetic)
# -----------------------------------------------------------------------------
def reference_interpolate(x, scale_factor, mode="bilinear", align_corners=False):
    n, c, h, w = x.shape
    sh, sw = (scale_factor if isinstance(scale_factor, (tuple, list))
              else (scale_factor, scale_factor))
    h_out = int(math.floor(h * sh))
    w_out = int(math.floor(w * sw))
    h0, h1, lh = _src_index_weights(h, h_out, mode, align_corners)
    w0, w1, lw = _src_index_weights(w, w_out, mode, align_corners)
    lh = jnp.asarray(lh, x.dtype)[None, None, :, None]
    lw = jnp.asarray(lw, x.dtype)[None, None, None, :]
    xh = x[:, :, h0, :] * (1 - lh) + x[:, :, h1, :] * lh
    y = xh[:, :, :, w0] * (1 - lw) + xh[:, :, :, w1] * lw
    return y


if __name__ == "__main__":
    key = jax.random.PRNGKey(0)
    # Small NCHW input (non-square spatial dims to catch any H/W mix-up).
    x = jax.random.normal(key, (2, 3, 16, 24), jnp.float32)

    configs = [
        (2.0, "bilinear", False),        # module defaults
        (2.0, "bilinear", True),         # DPT-style usage
        (2.0, "nearest", False),
        ((2.0, 1.5), "bilinear", False), # anisotropic scale
    ]
    for sf, mode, ac in configs:
        out = jax.block_until_ready(interpolate(x, sf, mode=mode, align_corners=ac))
        ref = reference_interpolate(x, sf, mode=mode, align_corners=ac)
        assert out.shape == ref.shape, (out.shape, ref.shape)
        err = float(jnp.max(jnp.abs(out - ref)))
        # f32 path uses precision=HIGHEST -> tight tolerance.
        assert jnp.allclose(out, ref, atol=1e-4, rtol=1e-4), (sf, mode, ac, err)

    # bf16 path: native-dtype MXU matmuls, looser tolerance.
    xb = x.astype(jnp.bfloat16)
    outb = jax.block_until_ready(interpolate(xb, 2.0, mode="bilinear", align_corners=True))
    refb = reference_interpolate(xb, 2.0, mode="bilinear", align_corners=True)
    assert outb.shape == refb.shape
    assert jnp.allclose(outb.astype(jnp.float32), refb.astype(jnp.float32),
                        atol=3e-2, rtol=3e-2)

    print("KERNEL_OK")
</pallas_src>

<mosaic_0001>
module attributes {stable_mosaic.version = 11 : i64} {
  func.func @kernel(%arg0: i32, %arg1: memref<32x16xf32, #tpu.memory_space<vmem>>, %arg2: memref<24x48xf32, #tpu.memory_space<vmem>>, %arg3: memref<3x16x24xf32, #tpu.memory_space<vmem>>, %arg4: memref<3x32x48xf32, #tpu.memory_space<vmem>>) attributes {dimension_semantics = [#tpu.dimension_semantics<parallel>], iteration_bounds = array<i64: 2>, scalar_prefetch = 0 : i64, scratch_operands = 0 : i64, tpu.core_type = #tpu.core_type<tc>, window_params = [{pipeline_mode = #tpu.pipeline_mode<synchronous>, transform_indices = @transform_0, window_bounds = array<i64: 32, 16>}, {pipeline_mode = #tpu.pipeline_mode<synchronous>, transform_indices = @transform_1, window_bounds = array<i64: 24, 48>}, {transform_indices = @transform_2, window_bounds = array<i64: 3, 16, 24>}, {transform_indices = @transform_3, window_bounds = array<i64: 3, 32, 48>}]} {
    %c0 = arith.constant 0 : index
    %c0_0 = arith.constant 0 : index
    %0 = vector.load %arg1[%c0, %c0_0] : memref<32x16xf32, #tpu.memory_space<vmem>>, vector<32x16xf32>
    %c0_1 = arith.constant 0 : index
    %c0_2 = arith.constant 0 : index
    %1 = vector.load %arg2[%c0_1, %c0_2] : memref<24x48xf32, #tpu.memory_space<vmem>>, vector<24x48xf32>
    %c0_3 = arith.constant 0 : index
    %c0_4 = arith.constant 0 : index
    %c0_5 = arith.constant 0 : index
    %2 = vector.load %arg3[%c0_3, %c0_4, %c0_5] : memref<3x16x24xf32, #tpu.memory_space<vmem>>, vector<3x16x24xf32>
    %3 = vector.shape_cast %2 : vector<3x16x24xf32> to vector<48x24xf32>
    %cst = arith.constant dense<0.000000e+00> : vector<48x48xf32>
    %4 = tpu.matmul %3, %1, %cst {dimension_numbers = #tpu.dot_dimension_numbers<[1], [0], [0], [1], [0, 0, 1, 1], [], []>, precision = #tpu.contract_precision<fp32>} : vector<48x24xf32>, vector<24x48xf32>, vector<48x48xf32> -> vector<48x48xf32>
    %5 = vector.shape_cast %4 : vector<48x48xf32> to vector<3x16x48xf32>
    %6 = vector.shape_cast %0 : vector<32x16xf32> to vector<1x32x16xf32>
    %7 = vector.shape_cast %6 : vector<1x32x16xf32> to vector<1x32x16xf32>
    %8 = vector.broadcast %7 : vector<1x32x16xf32> to vector<3x32x16xf32>
    %cst_6 = arith.constant dense<0.000000e+00> : vector<3x32x48xf32>
    %9 = tpu.matmul %8, %5, %cst_6 {dimension_numbers = #tpu.dot_dimension_numbers<[2], [1], [1], [2], [0, 0, 0, 1, 1, 2], [0], [0]>, precision = #tpu.contract_precision<fp32>} : vector<3x32x16xf32>, vector<3x16x48xf32>, vector<3x32x48xf32> -> vector<3x32x48xf32>
    %c0_7 = arith.constant 0 : index
    %c0_8 = arith.constant 0 : index
    %c0_9 = arith.constant 0 : index
    %10 = vector.load %arg4[%c0_7, %c0_8, %c0_9] : memref<3x32x48xf32, #tpu.memory_space<vmem>>, vector<3x32x48xf32>
    tpu.vector_store %arg4[%c0_7, %c0_8, %c0_9], %9 {strides = array<i32>} : memref<3x32x48xf32, #tpu.memory_space<vmem>>, vector<3x32x48xf32>,
    return
  }
  func.func @transform_0(%arg0: i32) -> (i32, i32) {
    %c0_i32 = arith.constant 0 : i32
    %c0_i32_0 = arith.constant 0 : i32
    %c0_i32_1 = arith.constant 0 : i32
    return %c0_i32, %c0_i32_0 : i32, i32
  }
  func.func @transform_1(%arg0: i32) -> (i32, i32) {
    %c0_i32 = arith.constant 0 : i32
    %c0_i32_0 = arith.constant 0 : i32
    %c0_i32_1 = arith.constant 0 : i32
    return %c0_i32, %c0_i32_0 : i32, i32
  }
  func.func @transform_2(%arg0: i32) -> (i32, i32, i32) {
    %c0_i32 = arith.constant 0 : i32
    %c0_i32_0 = arith.constant 0 : i32
    %c0_i32_1 = arith.constant 0 : i32
    return %arg0, %c0_i32, %c0_i32_0 : i32, i32, i32
  }
  func.func @transform_3(%arg0: i32) -> (i32, i32, i32) {
    %c0_i32 = arith.constant 0 : i32
    %c0_i32_0 = arith.constant 0 : i32
    %c0_i32_1 = arith.constant 0 : i32
    return %arg0, %c0_i32, %c0_i32_0 : i32, i32, i32
  }
}

</mosaic_0001>

<bundles_post_ra>
// kernel: tpu_custom_call.1
= control target key start
LH: loop header
LB: loop body
LE: loop exit
PB: predicated region body
PF: predicated region fallthrough
CT: control target
= control target key end

     0   :  { %8 = vsyncpa [#allocation3], 0  ;;  %s2015_s0 = inlined_call_operand.vmem [shape: f32[32,16], index: 0, kind: input, shape index: {}]   ;;  %s2016_s1 = inlined_call_operand.vmem [shape: f32[24,48], index: 1, kind: input, shape index: {}]   ;;  %s2017_s2 = inlined_call_operand.hbm [shape: f32[6,16,24], index: 2, kind: input, shape index: {}]   ;;  %s2018_s3 = inlined_call_operand.hbm [shape: f32[6,32,48], index: 3, kind: output, shape index: {}]  }
   0x1   :  { %10 = vsyncpa [#allocation3 + $0x1], 0 }
   0x2   :  { %11 = vsyncpa [#allocation4], 0 }
   0x3   :  { %13 = vsyncpa [#allocation4 + $0x1], 0  ;;  %s1622_s12 = smov 0   ;;  %s1624_s13 = smov 0  }
   0x4   :  { %s1626_s14 = smov 0   ;;  %s1628_s15 = smov 0  }
   0x5 LB: > { %s1643_s16 = sadd.s32 4294967295, %s1596_s15   ;;  %s1425_s17 = sadd.s32 4294967294, %s1596_s15   ;;  %s1596_s15 = sphi %s1628_s15, %s2026_s15   ;;  %s1592_s14 = sphi %s1626_s14, %s2025_s14   ;;  %s1588_s13 = sphi %s1624_s13, %s2024_s13   ;;  %s1584_s12 = sphi %s1622_s12, %s2023_s12  }
   0x6   : > { %s1647_s18 = sadd.s32 1, %s1596_s15   ;;  %s68_s19 = sadd.s32 1, %s1592_s14 }
   0x7   : > { %s65_s20 = ssub.s32 %s1596_s15, %s1647_s18  ;;  %p75_p0 = scmp.ne.s32.totalorder %s1592_s14, %s1588_s13 }
   0x8   : > { %p66_p1 = scmp.eq.s32.totalorder %s65_s20, 0  ;;  %p76_p2 = scmp.eq.s32.totalorder %s1596_s15, 0 }
   0x9   : > { %p81_p3 = scmp.ne.s32.totalorder %s1588_s13, %s1584_s12  ;;  %p82_p4 = scmp.eq.s32.totalorder %s1643_s16, 0 }
   0xa   : > { %s1659_s21 = scalar_select %p66_p1, %s1592_s14, %s68_s19  }
   0xb   : > { %p77_p5 = por %p76_p2, %p75_p0  ;;  %p1661_p6 = por %p82_p4, %p81_p3 }
   0xc   : > { %p105_p7 = scmp.eq.s32.totalorder %s1643_s16, 1  ;;  %p111_p8 = scmp.eq.s32.totalorder %s1425_s17, 1 }
   0xd   : > { %p1427_p9 = scmp.ge.s32.totalorder %s1596_s15, 2  ;;  %p1462_p10 = scmp.lt.s32.totalorder %s1596_s15, 2 }
   0xe   : > { %p1668_p11 = por %p105_p7, %p75_p0  ;;  %p1672_p12 = por %p111_p8, %p81_p3 }
   0xf   : > { %s137_s25 = sand.u32 1, %s1592_s14   ;;  %s1439_s26 = smul.u32 48, %s1596_s15 }
  0x10   : > { %s1447_s27 = smul.u32 48, %s137_s25  ;;  %p1681_p13 = pnand %p1462_p10, %p77_p5 }
  0x11   : > { %s147_s30 = scalar_lea.hbm %s2017_s2, %s1439_s26  ;;  %s138_s8 = scalar_lea.sflag [#allocation3], %s137_s25 }
  0x12   : > { %s148_s5 = sshll.u32 %s147_s30, 4  ;;  %s141_s6 = scalar_lea.vmem [#allocation2], %s1447_s27  ;;  %s149_s5 = int_to_ptr.hbm [resolvable:$true] %s148_s5 }
  0x13   : > { %s150_s7 = sshll.u32 %s141_s6, 4  ;;  %s1500_s9 = sshra.s32 %s149_s5, 4  ;;  %s151_s7 = int_to_ptr.vmem [resolvable:$true] %s150_s7  ;;  %s1501_s9 = int_to_ptr.hbm [resolvable:$true] %s1500_s9 }
  0x14   : > { %s1502_s10 = scalar_lea.hbm %s1501_s9, 48  ;;  %p1504_p1 = pneg %p1681_p13 }
  0x15   : > { %p1503_p0 = scmp.ne.s32.totalorder %s1501_s9, %s1502_s10  ;;  %s1507_s19 = scalar_lea.hbm %s2017_s2, 96 }
  0x16   : > { %p1508_p4 = scmp.lt.s32.totalorder %s1501_s9, %s2017_s2  ;;  %p1509_p5 = scmp.lt.s32.totalorder %s1507_s19, %s1502_s10 }
  0x17   : > { %p1505_p2 = pnand %p1504_p1, %p1503_p0 }
  0x18   : > { %p1510_p7 = por %p1509_p5, %p1508_p4 }
  0x19   : > { %p1506_p3 = pneg %p1505_p2 }
  0x1b   : > { %p1511_p8 = pnand %p1510_p7, %p1506_p3 }
  0x1d   : > { %1514 = shalt.err (!%p1511_p8)
}
  0x1e   : > { %s1598_s25 = smov 128   ;;  %s1599_s27 = smov 8  }
  0x1f   : > { %1457 = dma.hbm_to_vmem [thread:$0]  (!%p1681_p13), %s149_s5, 768, %s151_s7, %s138_s8, %s1598_s25, %s1598_s25, %s1599_s27  }
  0x20   : > { %p1430_p10 = scmp.ge.s32.totalorder %s1596_s15, 1  ;;  %p158_p0 = scmp.lt.s32.totalorder %s1596_s15, 3 }
  0x22   : > { %p159_p1 = pnand %p1430_p10, %p158_p0 }
  0x23   : > { %s1698_s28 = sand.u32 (!%p159_p1), 1, %s1588_s13  }
  0x24   : > { %162 = sbr.rel (%p159_p1) target bundleno = 544 (0x220), region = 32  ;;  %s165_s30 = scalar_lea.sflag (!%p159_p1), [#allocation3], %s1698_s28 }
  0x25   : > { %s1448_s29 = smul.u32 (!%p159_p1), 48, %s1698_s28 }
  0x27   : > { %s1702_s6 = scalar_lea.vmem (!%p159_p1), [#allocation2], %s1448_s29 }
  0x29   : > { %1575 = dma.done.wait (%p1661_p6), %s165_s30, 768  }
  0x2a   : > { %1577 = vsyncadd (%p1661_p6), %s165_s30, 4294966528  ;;  %vm207_vm0 = vcmask 195584   ;;  %v200_v0 = vld [vmem:[%s2016_s1 + $0x10] sm:$0xff]  ;;  %v199_v1 = vld [vmem:[%s2016_s1 + $0x8] sm:$0xff]  ;;  %vm553_vm1 = vcmask 130048   ;;  %s1449_s29 = smul.u32 96, %s1698_s28 }
  0x2b   : > { %v198_v2 = vld [vmem:[%s2016_s1] sm:$0xff]  ;;  %v1717_v3 = vand.u32 4294901760, %v200_v0  ;;  %v1719_v4 = vand.u32 4294901760, %v199_v1  ;;  %v206_v7 = vld [vmem:[%s1702_s6 + $0x28] sm:$0xff]  ;;  %v204_v39 = vld [vmem:[%s1702_s6 + $0x18] sm:$0xff]  ;;  %vm1322_vm2 = vcmask 392192  }
  0x2c   : > { %v1721_v5 = vand.u32 4294901760, %v198_v2  ;;  %v201_v6 = vld [vmem:[%s1702_s6] sm:$0xff]  ;;  %v202_v8 = vld [vmem:[%s1702_s6 + $0x8] sm:$0xff]  ;;  %v224_v10 = vsel %vm207_vm0, %v206_v7, 0  ;;  %v203_v12 = vld [vmem:[%s1702_s6 + $0x10] sm:$0xff]  ;;  %v218_v43 = vsel %vm207_vm0, %v204_v39, 0 }
  0x2d   : > { %v209_v9 = vsel %vm207_vm0, %v201_v6, 0  ;;  %v212_v11 = vsel %vm207_vm0, %v202_v8, 0  ;;  %240 = vmatpush.msra.mxu0 %v1717_v3  ;;  %1441 = vmatpush.msra.mxu2 %v1717_v3  ;;  %v308_v13 = vsub.f32 %v200_v0, %v1717_v3  ;;  %v1735_v15 = vand.u32 4294901760, %v224_v10  ;;  %v205_v47 = vld [vmem:[%s1702_s6 + $0x20] sm:$0xff]  ;;  %s1955_s30 = scalar_lea.vmem [#allocation5], %s1449_s29  ;;  %s1440_s6 = smul.u32 96, %s1643_s16 }
  0x2e   : > { %v1733_v14 = vand.u32 4294901760, %v209_v9  ;;  %v314_v16 = vsub.f32 %v199_v1, %v1719_v4  ;;  %v320_v17 = vsub.f32 %v198_v2, %v1721_v5  ;;  %v1739_v18 = vand.u32 4294901760, %v212_v11  ;;  %s1349_s8 = sshll.u32 %s1955_s30, 4  ;;  %s1336_s16 = scalar_lea.sflag [#allocation4], %s1698_s28  ;;  %s1350_s8 = int_to_ptr.vmem [resolvable:$true] %s1349_s8 }
  0x2f   : > { %v215_v19 = vsel %vm207_vm0, %v203_v12, 0  ;;  %242 = vmatpush.msra.mxu0 %v1719_v4  ;;  %1442 = vmatpush.msra.mxu2 %v1719_v4  ;;  %v309_v20 = vand.u32 4294901760, %v308_v13  ;;  %v1746_v22 = vsub.f32 %v224_v10, %v1735_v15  ;;  %v269_v46 = vand.u32 4294901760, %v218_v43  ;;  %s1348_s7 = scalar_lea.hbm %s2018_s3, %s1440_s6  ;;  %s1550_s19 = scalar_lea.hbm %s2018_s3, 192 }
  0x30   : > { %v246_v21 = vsub.f32 %v209_v9, %v1733_v14  ;;  %v315_v23 = vand.u32 4294901760, %v314_v16  ;;  %v321_v24 = vand.u32 4294901760, %v320_v17  ;;  %v254_v25 = vsub.f32 %v212_v11, %v1739_v18  ;;  %v194_v9 = vld [vmem:[%s2015_s0] sm:$0xff]  ;;  %s1351_s9 = sshll.u32 %s1348_s7, 4  ;;  %s1352_s9 = int_to_ptr.hbm [resolvable:$true] %s1351_s9 }
  0x31   : > { %244 = vmatpush.msra.mxu0 %v1721_v5  ;;  %1443 = vmatpush.msra.mxu2 %v1721_v5  ;;  %v310_v26 = vsub.f32 %v308_v13, %v309_v20  ;;  %v287_v28 = vand.u32 4294901760, %v1746_v22  ;;  %v1752_v31 = vand.u32 4294901760, %v215_v19  ;;  %v270_v49 = vsub.f32 %v218_v43, %v269_v46  ;;  %s1544_s10 = sshra.s32 %s1352_s9, 4  ;;  %s1545_s10 = int_to_ptr.hbm [resolvable:$true] %s1544_s10 }
  0x32   : > { %v247_v27 = vand.u32 4294901760, %v246_v21  ;;  %v316_v29 = vsub.f32 %v314_v16, %v315_v23  ;;  %v322_v30 = vsub.f32 %v320_v17, %v321_v24  ;;  %v255_v35 = vand.u32 4294901760, %v254_v25  ;;  %s1546_s22 = scalar_lea.hbm %s1545_s10, 96  ;;  %p1551_p3 = scmp.lt.s32.totalorder %s1545_s10, %s2018_s3 }
  0x33   : > { %365 = vmatpush.msrb.mxu2 %v308_v13  ;;  %475 = vmatpush.msrb.mxu0 %v309_v20  ;;  %v311_v32 = vand.u32 4294901760, %v310_v26  ;;  %v288_v34 = vsub.f32 %v1746_v22, %v287_v28  ;;  %v262_v42 = vsub.f32 %v215_v19, %v1752_v31  ;;  %v221_v50 = vsel %vm207_vm0, %v205_v47, 0  ;;  %v195_v19 = vld [vmem:[%s2015_s0 + $0x8] sm:$0xff]  ;;  %p1547_p6 = scmp.ne.s32.totalorder %s1545_s10, %s1546_s22  ;;  %p1552_p4 = scmp.lt.s32.totalorder %s1550_s19, %s1546_s22 }
  0x34   : > { %v248_v33 = vsub.f32 %v246_v21, %v247_v27  ;;  %v317_v36 = vand.u32 4294901760, %v316_v29  ;;  %v323_v40 = vand.u32 4294901760, %v322_v30  ;;  %v256_v41 = vsub.f32 %v254_v25, %v255_v35 }
  0x35   : > { %368 = vmatpush.msrb.mxu2 %v314_v16  ;;  %479 = vmatpush.msrb.mxu0 %v315_v23  ;;  %v289_v38 = vand.u32 4294901760, %v288_v34  ;;  %v263_v45 = vand.u32 4294901760, %v262_v42  ;;  %v271_v52 = vand.u32 4294901760, %v270_v49  ;;  %v277_v53 = vand.u32 4294901760, %v221_v50  ;;  %v196_v34 = vld [vmem:[%s2015_s0 + $0x10] sm:$0xff]  ;;  %p1548_p13 = pnand %p1547_p6, %p1668_p11  ;;  %p1553_p5 = por %p1552_p4, %p1551_p3 }
  0x36   : > { %312 = vmatpush.msra.mxu1 %v311_v32  ;;  %1444 = vmatpush.msra.mxu3 %v311_v32  ;;  %v249_v37 = vand.u32 4294901760, %v248_v33  ;;  %v257_v44 = vand.u32 4294901760, %v256_v41  ;;  %v555_v13 = vsel %vm553_vm1, %v194_v9, 0 }
  0x37   : > { %371 = vmatpush.msrb.mxu2 %v320_v17  ;;  %483 = vmatpush.msrb.mxu0 %v321_v24  ;;  %v264_v48 = vsub.f32 %v262_v42, %v263_v45  ;;  %v272_v54 = vsub.f32 %v270_v49, %v271_v52  ;;  %v278_v55 = vsub.f32 %v221_v50, %v277_v53  ;;  %v1795_v17 = vand.u32 4294901760, %v555_v13  ;;  %p1549_p2 = pneg %p1548_p13 }
  0x38   : > { %250 = vmatmul.f32.vlgmr.msra.gmra.mxu0 %v249_v37  ;;  %290 = vmatmul.f32.vlgmr.msra.gmra.mxu2 %v289_v38 }
  0x39   : > { %318 = vmatpush.msra.mxu1 %v317_v36  ;;  %1445 = vmatpush.msra.mxu3 %v317_v36  ;;  %v265_v51 = vand.u32 4294901760, %v264_v48  ;;  %v273_v56 = vand.u32 4294901760, %v272_v54  ;;  %v279_v57 = vand.u32 4294901760, %v278_v55  ;;  %v197_v54 = vld [vmem:[%s2015_s0 + $0x18] sm:$0xff]  ;;  %p1554_p7 = pnand %p1553_p5, %p1549_p2 }
  0x3b   : > { %324 = vmatpush.msra.mxu1 %v323_v40  ;;  %1446 = vmatpush.msra.mxu3 %v323_v40  ;;  %v280_v58 = vsub.f32 %v278_v55, %v279_v57 }
  0x3c   : > { %326 = vmatmul.f32.vlgmr.msra.gmra.mxu1 %v1733_v14  ;;  %346 = vmatmul.f32.vlgmr.msra.gmra.mxu3 %v1735_v15 }
  0x3d   : > { %417 = vmatpush.msrb.mxu3 %v1717_v3  ;;  %523 = vmatpush.msrb.mxu1 %v1717_v3  ;;  %v281_v59 = vand.u32 4294901760, %v280_v58 }
  0x3f   : > { %419 = vmatpush.msrb.mxu3 %v1719_v4  ;;  %525 = vmatpush.msrb.mxu1 %v1719_v4 }
  0x40   : > { %258 = vmatmul.f32.gmra.mxu0 %v257_v44  ;;  %374 = vmatmul.f32.vlgmr.msrb.gmra.mxu2 %v246_v21 }
  0x41   : > { %421 = vmatpush.msrb.mxu3 %v1721_v5  ;;  %527 = vmatpush.msrb.mxu1 %v1721_v5 }
  0x44   : > { %330 = vmatmul.f32.gmra.mxu1 %v1739_v18  ;;  %425 = vmatmul.f32.vlgmr.msrb.gmra.mxu3 %v247_v27 }
  0x48   : > { %266 = vmatmul.f32.gmra.mxu0 %v265_v51  ;;  %379 = vmatmul.f32.gmra.mxu2 %v254_v25  ;;  %v558_v25 = vsel %vm553_vm1, %v195_v19, 0 }
  0x4c   : > { %334 = vmatmul.f32.gmra.mxu1 %v1752_v31  ;;  %431 = vmatmul.f32.gmra.mxu3 %v255_v35 }
  0x50   : > { %274 = vmatmul.f32.gmra.mxu0 %v273_v56  ;;  %384 = vmatmul.f32.gmra.mxu2 %v262_v42  ;;  %v561_v42 = vsel %vm553_vm1, %v196_v34, 0 }
  0x54   : > { %338 = vmatmul.f32.gmra.mxu1 %v269_v46  ;;  %437 = vmatmul.f32.gmra.mxu3 %v263_v45 }
  0x58   : > { %282 = vmatmul.f32.gmra.mxu0 %v281_v59  ;;  %389 = vmatmul.f32.gmra.mxu2 %v270_v49  ;;  %v1826_v49 = vand.u32 4294901760, %v561_v42 }
  0x5c   : > { %342 = vmatmul.f32.gmra.mxu1 %v277_v53  ;;  %443 = vmatmul.f32.gmra.mxu3 %v271_v52 }
  0x60   : > { %394 = vmatmul.f32.gmra.mxu2 %v278_v55  ;;  %485 = vmatmul.f32.vlgmr.msrb.gmra.mxu0 %v1733_v14 }
  0x64   : > { %449 = vmatmul.f32.gmra.mxu3 %v279_v57  ;;  %529 = vmatmul.f32.vlgmr.msrb.gmra.mxu1 %v1733_v14 }
  0x68   : > { %399 = vmatmul.f32.gmra.mxu2 %v1746_v22  ;;  %489 = vmatmul.f32.gmra.mxu0 %v1739_v18  ;;  %v1801_v22 = vsub.f32 %v555_v13, %v1795_v17 }
  0x6a   : > { %v1805_v30 = vand.u32 4294901760, %v1801_v22 }
  0x6c   : > { %455 = vmatmul.f32.gmra.mxu3 %v287_v28  ;;  %533 = vmatmul.f32.gmra.mxu1 %v1739_v18  ;;  %v587_v37 = vsub.f32 %v1801_v22, %v1805_v30 }
  0x6e   : > { %v1821_v47 = vand.u32 4294901760, %v587_v37 }
  0x70   : > { %493 = vmatmul.f32.gmra.mxu0 %v1752_v31 }
  0x74   : > { %537 = vmatmul.f32.gmra.mxu1 %v1752_v31  ;;  %v1807_v31 = vand.u32 4294901760, %v558_v25 }
  0x76   : > { %v1817_v38 = vsub.f32 %v558_v25, %v1807_v31 }
  0x78   : > { %497 = vmatmul.f32.gmra.mxu0 %v269_v46  ;;  %v1824_v48 = vand.u32 4294901760, %v1817_v38 }
  0x7a   : > { %v595_v59 = vsub.f32 %v1817_v38, %v1824_v48 }
  0x7c   : > { %541 = vmatmul.f32.gmra.mxu1 %v269_v46 }
  0x80   : > { %501 = vmatmul.f32.gmra.mxu0 %v277_v53 }
  0x84   : > { %545 = vmatmul.f32.gmra.mxu1 %v277_v53 }
  0x88   : > { %505 = vmatmul.f32.gmra.mxu0 %v1735_v15 }
  0x8c   : > { %549 = vmatmul.f32.gmra.mxu1 %v1735_v15 }
  0xb5   : > { %v251_v60 = vpop.f32.mrf.mxu0 }
  0xb9   : > { %v327_v61 = vpop.f32.mrf.mxu1 }
  0xba   : > { %v328_v12 = vadd.f32 %v327_v61, %v251_v60  ;;  %v1838_v60 = vsub.f32 %v561_v42, %v1826_v49 }
  0xbb   : > { %v1783_v0 = vpop.f32.mrf.mxu2 }
  0xbd   : > { %v259_v62 = vpop.f32.mrf.mxu0 }
  0xbf   : > { %v1785_v2 = vpop.f32.mrf.mxu3 }
  0xc1   : > { %v331_v63 = vpop.f32.mrf.mxu1 }
  0xc2   : > { %v332_v23 = vadd.f32 %v331_v63, %v259_v62 }
  0xc3   : > { %v375_v5 = vpop.f32.mrf.mxu2 }
  0xc4   : > { %v376_v15 = vadd.f32 %v375_v5, %v328_v12 }
  0xc5   : > { %v267_v1 = vpop.f32.mrf.mxu0 }
  0xc7   : > { %v426_v6 = vpop.f32.mrf.mxu3 }
  0xc8   : > { %v427_v18 = vadd.f32 %v426_v6, %v376_v15  ;;  %v1842_v6 = vand.u32 4294901760, %v595_v59 }
  0xc9   : > { %v335_v3 = vpop.f32.mrf.mxu1 }
  0xca   : > { %v336_v39 = vadd.f32 %v335_v3, %v267_v1  ;;  %v564_v1 = vsel %vm553_vm1, %v197_v54, 0 }
  0xcb   : > { %v380_v10 = vpop.f32.mrf.mxu2  ;;  %v1847_v9 = vand.u32 4294901760, %v564_v1 }
  0xcc   : > { %v381_v27 = vadd.f32 %v380_v10, %v332_v23 }
  0xcd   : > { %v275_v4 = vpop.f32.mrf.mxu0 }
  0xcf   : > { %v432_v14 = vpop.f32.mrf.mxu3 }
  0xd0   : > { %v433_v32 = vadd.f32 %v432_v14, %v381_v27 }
  0xd1   : > { %v339_v7 = vpop.f32.mrf.mxu1 }
  0xd2   : > { %v340_v57 = vadd.f32 %v339_v7, %v275_v4  ;;  %v1845_v7 = vand.u32 4294901760, %v1838_v60 }
  0xd3   : > { %v385_v26 = vpop.f32.mrf.mxu2 }
  0xd4   : > { %v386_v43 = vadd.f32 %v385_v26, %v336_v39  ;;  %v603_v19 = vsub.f32 %v1838_v60, %v1845_v7 }
  0xd5   : > { %v1787_v8 = vpop.f32.mrf.mxu0 }
  0xd7   : > { %v438_v28 = vpop.f32.mrf.mxu3 }
  0xd8   : > { %v439_v50 = vadd.f32 %v438_v28, %v386_v43  ;;  %v1868_v28 = vand.u32 4294901760, %v603_v19 }
  0xd9   : > { %v1792_v11 = vpop.f32.mrf.mxu1 }
  0xdb   : > { %v390_v45 = vpop.f32.mrf.mxu2 }
  0xdc   : > { %v391_v3 = vadd.f32 %v390_v45, %v340_v57 }
  0xdd   : > { %v486_v16 = vpop.f32.mrf.mxu0 }
  0xde   : > { %v487_v20 = vadd.f32 %v486_v16, %v427_v18 }
  0xdf   : > { %v444_v53 = vpop.f32.mrf.mxu3 }
  0xe0   : > { %v445_v10 = vadd.f32 %v444_v53, %v391_v3 }
  0xe1   : > { %v530_v21 = vpop.f32.mrf.mxu1 }
  0xe2   : > { %v531_v24 = vadd.f32 %v530_v21, %v487_v20  ;;  %v1856_v20 = vsub.f32 %v564_v1, %v1847_v9  ;;  %v344_v21 = vadd.f32 %v1792_v11, %v1787_v8 }
  0xe3   : > { %v395_v14 = vpop.f32.mrf.mxu2 }
  0xe4   : > { %v1809_v33 = vand.u32 4294901760, %v531_v24  ;;  %v396_v25 = vadd.f32 %v395_v14, %v344_v21 }
  0xe5   : > { %v490_v29 = vpop.f32.mrf.mxu0 }
  0xe6   : > { %v491_v35 = vadd.f32 %v490_v29, %v433_v32  ;;  %v638_v40 = vsub.f32 %v531_v24, %v1809_v33  ;;  %v1871_v29 = vand.u32 4294901760, %v1856_v20 }
  0xe7   : > { %v450_v16 = vpop.f32.mrf.mxu3 }
  0xe8   : > { %v639_v52 = vand.u32 4294901760, %v638_v40  ;;  %v451_v8 = vadd.f32 %v450_v16, %v396_v25  ;;  %v611_v39 = vsub.f32 %v1856_v20, %v1871_v29 }
  0xe9   : > { %v534_v36 = vpop.f32.mrf.mxu1 }
  0xea   : > { %v535_v41 = vadd.f32 %v534_v36, %v491_v35  ;;  %v640_v63 = vsub.f32 %v638_v40, %v639_v52  ;;  %v1889_v45 = vand.u32 4294901760, %v611_v39 }
  0xeb   : > { %v400_v36 = vpop.f32.mrf.mxu2 }
  0xec   : > { %v580_v44 = vand.u32 4294901760, %v535_v41  ;;  %v641_v13 = vand.u32 4294901760, %v640_v63 }
  0xed   : > { %v494_v46 = vpop.f32.mrf.mxu0 }
  0xee   : > { %v632_v51 = vsub.f32 %v535_v41, %v580_v44  ;;  %581 = vmatpush.msra.mxu2 %v580_v44  ;;  %798 = vmatpush.msra.mxu1 %v580_v44  ;;  %v495_v56 = vadd.f32 %v494_v46, %v439_v50 }
  0xef   : > { %v456_v43 = vpop.f32.mrf.mxu3 }
  0xf0   : > { %v633_v55 = vand.u32 4294901760, %v632_v51  ;;  %583 = vmatpush.msra.mxu2 %v1809_v33  ;;  %800 = vmatpush.msra.mxu1 %v1809_v33 }
  0xf1   : > { %v538_v58 = vpop.f32.mrf.mxu1  ;;  %589 = vmatmul.f32.vlgmr.msra.gmra.mxu2 %v1821_v47  ;;  %802 = vmatmul.f32.vlgmr.msra.gmra.mxu1 %v1795_v17 }
  0xf2   : > { %v634_v61 = vsub.f32 %v632_v51, %v633_v55  ;;  %v539_v62 = vadd.f32 %v538_v58, %v495_v56  ;;  %676 = vmatpush.msrb.mxu2 %v632_v51  ;;  %761 = vmatpush.msra.mxu0 %v633_v55 }
  0xf4   : > { %679 = vmatpush.msrb.mxu2 %v638_v40  ;;  %765 = vmatpush.msra.mxu0 %v639_v52  ;;  %v635_v4 = vand.u32 4294901760, %v634_v61  ;;  %v1849_v12 = vand.u32 4294901760, %v539_v62 }
  0xf5   : > { %v498_v5 = vpop.f32.mrf.mxu0  ;;  %767 = vmatmul.f32.vlgmr.msra.gmra.mxu0 %v1795_v17 }
  0xf6   : > { %636 = vmatpush.msra.mxu3 %v635_v4  ;;  %v499_v15 = vadd.f32 %v498_v5, %v445_v10  ;;  %v1861_v23 = vsub.f32 %v539_v62, %v1849_v12 }
  0xf8   : > { %642 = vmatpush.msra.mxu3 %v641_v13  ;;  %v891_v32 = vand.u32 4294901760, %v1861_v23 }
  0xf9   : > { %v542_v18 = vpop.f32.mrf.mxu1  ;;  %597 = vmatmul.f32.gmra.mxu2 %v1842_v6  ;;  %644 = vmatmul.f32.vlgmr.msra.gmra.mxu3 %v1795_v17 }
  0xfa   : > { %v543_v24 = vadd.f32 %v542_v18, %v499_v15  ;;  %716 = vmatpush.msrb.mxu3 %v580_v44  ;;  %806 = vmatmul.f32.gmra.mxu1 %v1807_v31  ;;  %v892_v42 = vsub.f32 %v1861_v23, %v891_v32 }
  0xfc   : > { %v1864_v26 = vand.u32 4294901760, %v543_v24  ;;  %718 = vmatpush.msrb.mxu3 %v1809_v33  ;;  %v348_v33 = vadd.f32 %v1785_v2, %v1783_v0  ;;  %v893_v51 = vand.u32 4294901760, %v892_v42 }
  0xfd   : > { %v502_v27 = vpop.f32.mrf.mxu0  ;;  %771 = vmatmul.f32.gmra.mxu0 %v1807_v31 }
  0xfe   : > { %v884_v11 = vsub.f32 %v543_v24, %v1864_v26  ;;  %833 = vmatpush.msra.mxu2 %v1864_v26  ;;  %968 = vmatpush.msrb.mxu1 %v1864_v26  ;;  %v503_v35 = vadd.f32 %v502_v27, %v451_v8  ;;  %v401_v0 = vadd.f32 %v400_v36, %v348_v33 }
 0x100   : > { %v885_v34 = vand.u32 4294901760, %v884_v11  ;;  %835 = vmatpush.msra.mxu2 %v1849_v12  ;;  %928 = vmatpush.msrb.mxu0 %v884_v11  ;;  %v457_v46 = vadd.f32 %v456_v43, %v401_v0 }
 0x101   : > { %970 = vmatpush.msrb.mxu1 %v1849_v12  ;;  %v546_v37 = vpop.f32.mrf.mxu1  ;;  %605 = vmatmul.f32.gmra.mxu2 %v1868_v28 }
 0x102   : > { %v886_v40 = vsub.f32 %v884_v11, %v885_v34  ;;  %v547_v41 = vadd.f32 %v546_v37, %v503_v35  ;;  %648 = vmatmul.f32.gmra.mxu3 %v1807_v31  ;;  %931 = vmatpush.msrb.mxu0 %v1861_v23 }
 0x103   : > { %810 = vmatmul.f32.gmra.mxu1 %v1826_v49 }
 0x104   : > { %v887_v2 = vand.u32 4294901760, %v886_v40  ;;  %v1086_v50 = vand.u32 4294901760, %v547_v41 }
 0x105   : > { %v506_v44 = vpop.f32.mrf.mxu0  ;;  %775 = vmatmul.f32.gmra.mxu0 %v1826_v49 }
 0x106   : > { %888 = vmatpush.msra.mxu3 %v887_v2  ;;  %v507_v52 = vadd.f32 %v506_v44, %v457_v46  ;;  %v1142_v54 = vsub.f32 %v547_v41, %v1086_v50 }
 0x108   : > { %894 = vmatpush.msra.mxu3 %v893_v51  ;;  %v1143_v58 = vand.u32 4294901760, %v1142_v54 }
 0x109   : > { %v550_v53 = vpop.f32.mrf.mxu1  ;;  %613 = vmatmul.f32.gmra.mxu2 %v1889_v45 }
 0x10a   : > { %v551_v55 = vadd.f32 %v550_v53, %v507_v52  ;;  %652 = vmatmul.f32.gmra.mxu3 %v1826_v49  ;;  %v1144_v62 = vsub.f32 %v1142_v54, %v1143_v58 }
 0x10b   : > { %814 = vmatmul.f32.gmra.mxu1 %v1847_v9 }
 0x10c   : > { %v1084_v56 = vand.u32 4294901760, %v551_v55  ;;  %v1145_v1 = vand.u32 4294901760, %v1144_v62 }
 0x10d   : > { %779 = vmatmul.f32.gmra.mxu0 %v1847_v9 }
 0x10e   : > { %v1136_v57 = vsub.f32 %v551_v55, %v1084_v56  ;;  %1085 = vmatpush.msra.mxu0 %v1084_v56 }
 0x110   : > { %v1137_v59 = vand.u32 4294901760, %v1136_v57  ;;  %1087 = vmatpush.msra.mxu0 %v1086_v50 }
 0x111   : > { %682 = vmatmul.f32.vlgmr.msrb.gmra.mxu2 %v1801_v22 }
 0x112   : > { %v1138_v61 = vsub.f32 %v1136_v57, %v1137_v59  ;;  %656 = vmatmul.f32.gmra.mxu3 %v1847_v9  ;;  %1013 = vmatpush.msrb.mxu2 %v885_v34 }
 0x113   : > { %974 = vmatmul.f32.vlgmr.msrb.gmra.mxu1 %v1805_v30 }
 0x114   : > { %1017 = vmatpush.msrb.mxu2 %v891_v32  ;;  %v1139_v63 = vand.u32 4294901760, %v1138_v61 }
 0x115   : > { %934 = vmatmul.f32.vlgmr.msrb.gmra.mxu0 %v1801_v22 }
 0x116   : > { %1265 = vmatpush.msrb.mxu0 %v1137_v59  ;;  %1140 = vmatpush.msra.mxu1 %v1139_v63 }
 0x118   : > { %1269 = vmatpush.msrb.mxu0 %v1143_v58  ;;  %1146 = vmatpush.msra.mxu1 %v1145_v1 }
 0x119   : > { %687 = vmatmul.f32.gmra.mxu2 %v1817_v38 }
 0x11a   : > { %1302 = vmatpush.msrb.mxu1 %v1084_v56  ;;  %722 = vmatmul.f32.vlgmr.msrb.gmra.mxu3 %v1805_v30 }
 0x11b   : > { %1050 = vmatpush.msrb.mxu3 %v1864_v26  ;;  %980 = vmatmul.f32.gmra.mxu1 %v1824_v48 }
 0x11c   : > { %1304 = vmatpush.msrb.mxu1 %v1086_v50 }
 0x11d   : > { %1052 = vmatpush.msrb.mxu3 %v1849_v12  ;;  %939 = vmatmul.f32.gmra.mxu0 %v1817_v38 }
 0x121   : > { %692 = vmatmul.f32.gmra.mxu2 %v1838_v60 }
 0x122   : > { %728 = vmatmul.f32.gmra.mxu3 %v1824_v48 }
 0x123   : > { %986 = vmatmul.f32.gmra.mxu1 %v1845_v7 }
 0x125   : > { %944 = vmatmul.f32.gmra.mxu0 %v1838_v60 }
 0x129   : > { %697 = vmatmul.f32.gmra.mxu2 %v1856_v20 }
 0x12a   : > { %734 = vmatmul.f32.gmra.mxu3 %v1845_v7 }
 0x12b   : > { %992 = vmatmul.f32.gmra.mxu1 %v1871_v29 }
 0x12d   : > { %949 = vmatmul.f32.gmra.mxu0 %v1856_v20 }
 0x131   : > { %841 = vmatmul.f32.vlgmr.msra.gmra.mxu2 %v1821_v47 }
 0x132   : > { %740 = vmatmul.f32.gmra.mxu3 %v1871_v29  ;;  %1180 = vmatpush.msra.mxu2 %v1136_v57 }
 0x133   : > { %1148 = vmatmul.f32.vlgmr.msra.gmra.mxu1 %v1795_v17 }
 0x134   : > { %1183 = vmatpush.msra.mxu2 %v1142_v54 }
 0x135   : > { %1093 = vmatmul.f32.vlgmr.msra.gmra.mxu0 %v1821_v47 }
 0x139   : > { %849 = vmatmul.f32.gmra.mxu2 %v1842_v6 }
 0x13a   : > { %896 = vmatmul.f32.vlgmr.msra.gmra.mxu3 %v1795_v17 }
 0x13b   : > { %1220 = vmatpush.msra.mxu3 %v1084_v56  ;;  %1152 = vmatmul.f32.gmra.mxu1 %v1807_v31 }
 0x13d   : > { %1222 = vmatpush.msra.mxu3 %v1086_v50  ;;  %1101 = vmatmul.f32.gmra.mxu0 %v1842_v6 }
 0x141   : > { %857 = vmatmul.f32.gmra.mxu2 %v1868_v28 }
 0x142   : > { %900 = vmatmul.f32.gmra.mxu3 %v1807_v31 }
 0x143   : > { %1156 = vmatmul.f32.gmra.mxu1 %v1826_v49 }
 0x145   : > { %1109 = vmatmul.f32.gmra.mxu0 %v1868_v28 }
 0x149   : > { %865 = vmatmul.f32.gmra.mxu2 %v1889_v45 }
 0x14a   : > { %904 = vmatmul.f32.gmra.mxu3 %v1826_v49 }
 0x14b   : > { %1160 = vmatmul.f32.gmra.mxu1 %v1847_v9 }
 0x14d   : > { %1117 = vmatmul.f32.gmra.mxu0 %v1889_v45 }
 0x151   : > { %1019 = vmatmul.f32.vlgmr.msrb.gmra.mxu2 %v1795_v17 }
 0x152   : > { %908 = vmatmul.f32.gmra.mxu3 %v1847_v9 }
 0x153   : > { %1306 = vmatmul.f32.vlgmr.msrb.gmra.mxu1 %v1795_v17 }
 0x155   : > { %1271 = vmatmul.f32.vlgmr.msrb.gmra.mxu0 %v1795_v17 }
 0x159   : > { %1023 = vmatmul.f32.gmra.mxu2 %v1807_v31 }
 0x15a   : > { %1054 = vmatmul.f32.vlgmr.msrb.gmra.mxu3 %v1795_v17 }
 0x15b   : > { %1310 = vmatmul.f32.gmra.mxu1 %v1807_v31 }
 0x15d   : > { %1275 = vmatmul.f32.gmra.mxu0 %v1807_v31 }
 0x161   : > { %1027 = vmatmul.f32.gmra.mxu2 %v1826_v49 }
 0x162   : > { %1058 = vmatmul.f32.gmra.mxu3 %v1807_v31 }
 0x163   : > { %1314 = vmatmul.f32.gmra.mxu1 %v1826_v49 }
 0x165   : > { %1279 = vmatmul.f32.gmra.mxu0 %v1826_v49 }
 0x169   : > { %1031 = vmatmul.f32.gmra.mxu2 %v1847_v9 }
 0x16a   : > { %1062 = vmatmul.f32.gmra.mxu3 %v1826_v49 }
 0x16b   : > { %1318 = vmatmul.f32.gmra.mxu1 %v1847_v9 }
 0x16d   : > { %1283 = vmatmul.f32.gmra.mxu0 %v1847_v9 }
 0x16e   : > { %v803_v49 = vpop.f32.mrf.mxu1 }
 0x171   : > { %1186 = vmatmul.f32.vlgmr.msra.gmra.mxu2 %v1801_v22 }
 0x172   : > { %1066 = vmatmul.f32.gmra.mxu3 %v1847_v9  ;;  %v768_v3 = vpop.f32.mrf.mxu0 }
 0x174   : > { %v590_v17 = vpop.f32.mrf.mxu2 }
 0x177   : > { %v807_v9 = vpop.f32.mrf.mxu1 }
 0x179   : > { %1191 = vmatmul.f32.gmra.mxu2 %v1817_v38 }
 0x17a   : > { %1226 = vmatmul.f32.vlgmr.msra.gmra.mxu3 %v1805_v30  ;;  %v772_v22 = vpop.f32.mrf.mxu0 }
 0x17c   : > { %v645_v31 = vpop.f32.mrf.mxu3  ;;  %v598_v47 = vpop.f32.mrf.mxu2 }
 0x17d   : > { %v646_v13 = vadd.f32 %v645_v31, %v590_v17 }
 0x181   : > { %1196 = vmatmul.f32.gmra.mxu2 %v1838_v60  ;;  %v811_v60 = vpop.f32.mrf.mxu1 }
 0x182   : > { %1232 = vmatmul.f32.gmra.mxu3 %v1824_v48  ;;  %v776_v30 = vpop.f32.mrf.mxu0 }
 0x184   : > { %v606_v4 = vpop.f32.mrf.mxu2 }
 0x185   : > { %v649_v5 = vpop.f32.mrf.mxu3 }
 0x189   : > { %1201 = vmatmul.f32.gmra.mxu2 %v1856_v20  ;;  %v815_v20 = vpop.f32.mrf.mxu1 }
 0x18a   : > { %1238 = vmatmul.f32.gmra.mxu3 %v1845_v7  ;;  %v780_v16 = vpop.f32.mrf.mxu0  ;;  %v650_v7 = vadd.f32 %v649_v5, %v598_v47 }
 0x18c   : > { %v614_v6 = vpop.f32.mrf.mxu2 }
 0x18d   : > { %v653_v38 = vpop.f32.mrf.mxu3 }
 0x191   : > { %v975_v11 = vpop.f32.mrf.mxu1 }
 0x192   : > { %1244 = vmatmul.f32.gmra.mxu3 %v1871_v29  ;;  %v935_v27 = vpop.f32.mrf.mxu0  ;;  %v654_v29 = vadd.f32 %v653_v38, %v606_v4 }
 0x194   : > { %v683_v10 = vpop.f32.mrf.mxu2 }
 0x195   : > { %v657_v12 = vpop.f32.mrf.mxu3  ;;  %v684_v48 = vadd.f32 %v683_v10, %v646_v13 }
 0x196   : > { %v658_v39 = vadd.f32 %v657_v12, %v614_v6 }
 0x199   : > { %v981_v0 = vpop.f32.mrf.mxu1 }
 0x19a   : > { %v940_v37 = vpop.f32.mrf.mxu0 }
 0x19c   : > { %v688_v14 = vpop.f32.mrf.mxu2 }
 0x19d   : > { %v723_v15 = vpop.f32.mrf.mxu3  ;;  %v689_v23 = vadd.f32 %v688_v14, %v650_v7 }
 0x19e   : > { %v724_v18 = vadd.f32 %v723_v15, %v684_v48 }
 0x1a0   : > { %v769_v19 = vadd.f32 %v768_v3, %v724_v18 }
 0x1a1   : > { %v987_v52 = vpop.f32.mrf.mxu1 }
 0x1a2   : > { %v804_v21 = vadd.f32 %v803_v49, %v769_v19  ;;  %v945_v46 = vpop.f32.mrf.mxu0 }
 0x1a4   : > { %1323 = vst.msk [vmem:[%s1955_s30] sm:$0xff] %vm1322_vm2, %v804_v21  ;;  %v693_v24 = vpop.f32.mrf.mxu2 }
 0x1a5   : > { %v729_v25 = vpop.f32.mrf.mxu3  ;;  %v694_v32 = vadd.f32 %v693_v24, %v654_v29 }
 0x1a6   : > { %v730_v26 = vadd.f32 %v729_v25, %v689_v23 }
 0x1a8   : > { %v773_v28 = vadd.f32 %v772_v22, %v730_v26 }
 0x1a9   : > { %v993_v56 = vpop.f32.mrf.mxu1 }
 0x1aa   : > { %v808_v8 = vadd.f32 %v807_v9, %v773_v28  ;;  %v950_v55 = vpop.f32.mrf.mxu0 }
 0x1ac   : > { %1324 = vst.msk [vmem:[%s1955_s30 + $0x8] sm:$0xff] %vm1322_vm2, %v808_v8  ;;  %v698_v34 = vpop.f32.mrf.mxu2 }
 0x1ad   : > { %v735_v35 = vpop.f32.mrf.mxu3  ;;  %v699_v41 = vadd.f32 %v698_v34, %v658_v39 }
 0x1ae   : > { %v736_v33 = vadd.f32 %v735_v35, %v694_v32 }
 0x1b0   : > { %v777_v36 = vadd.f32 %v776_v30, %v736_v33 }
 0x1b1   : > { %v1149_v62 = vpop.f32.mrf.mxu1 }
 0x1b2   : > { %v812_v40 = vadd.f32 %v811_v60, %v777_v36  ;;  %v1094_v59 = vpop.f32.mrf.mxu0 }
 0x1b3   : > { %v1150_v34 = vadd.f32 %v1149_v62, %v1094_v59 }
 0x1b4   : > { %1325 = vst.msk [vmem:[%s1955_s30 + $0x10] sm:$0xff] %vm1322_vm2, %v812_v40  ;;  %v842_v42 = vpop.f32.mrf.mxu2 }
 0x1b5   : > { %v741_v43 = vpop.f32.mrf.mxu3 }
 0x1b6   : > { %v742_v2 = vadd.f32 %v741_v43, %v699_v41 }
 0x1b8   : > { %v781_v44 = vadd.f32 %v780_v16, %v742_v2 }
 0x1b9   : > { %v1153_v22 = vpop.f32.mrf.mxu1 }
 0x1ba   : > { %v816_v45 = vadd.f32 %v815_v20, %v781_v44  ;;  %v1102_v31 = vpop.f32.mrf.mxu0 }
 0x1bb   : > { %v1154_v41 = vadd.f32 %v1153_v22, %v1102_v31 }
 0x1bc   : > { %1326 = vst.msk [vmem:[%s1955_s30 + $0x18] sm:$0xff] %vm1322_vm2, %v816_v45  ;;  %v850_v50 = vpop.f32.mrf.mxu2 }
 0x1bd   : > { %v897_v51 = vpop.f32.mrf.mxu3 }
 0x1be   : > { %v898_v61 = vadd.f32 %v897_v51, %v842_v42 }
 0x1c0   : > { %v936_v17 = vadd.f32 %v935_v27, %v898_v61 }
 0x1c1   : > { %v1157_v15 = vpop.f32.mrf.mxu1 }
 0x1c2   : > { %v976_v47 = vadd.f32 %v975_v11, %v936_v17  ;;  %v1110_v10 = vpop.f32.mrf.mxu0 }
 0x1c4   : > { %v858_v53 = vpop.f32.mrf.mxu2 }
 0x1c5   : > { %v901_v54 = vpop.f32.mrf.mxu3 }
 0x1c6   : > { %v902_v3 = vadd.f32 %v901_v54, %v850_v50  ;;  %v1158_v50 = vadd.f32 %v1157_v15, %v1110_v10 }
 0x1c8   : > { %v941_v6 = vadd.f32 %v940_v37, %v902_v3 }
 0x1c9   : > { %v1161_v25 = vpop.f32.mrf.mxu1 }
 0x1ca   : > { %v982_v9 = vadd.f32 %v981_v0, %v941_v6  ;;  %v1118_v21 = vpop.f32.mrf.mxu0 }
 0x1cb   : > { %v1162_v59 = vadd.f32 %v1161_v25, %v1118_v21 }
 0x1cc   : > { %v866_v57 = vpop.f32.mrf.mxu2 }
 0x1cd   : > { %v905_v58 = vpop.f32.mrf.mxu3 }
 0x1ce   : > { %v906_v30 = vadd.f32 %v905_v58, %v858_v53 }
 0x1d0   : > { %v946_v48 = vadd.f32 %v945_v46, %v906_v30 }
 0x1d1   : > { %v1307_v32 = vpop.f32.mrf.mxu1 }
 0x1d2   : > { %v988_v16 = vadd.f32 %v987_v52, %v946_v48  ;;  %v1272_v11 = vpop.f32.mrf.mxu0 }
 0x1d4   : > { %v1020_v63 = vpop.f32.mrf.mxu2 }
 0x1d5   : > { %v909_v1 = vpop.f32.mrf.mxu3  ;;  %v1021_v49 = vadd.f32 %v1020_v63, %v976_v47 }
 0x1d6   : > { %v910_v18 = vadd.f32 %v909_v1, %v866_v57 }
 0x1d8   : > { %v951_v23 = vadd.f32 %v950_v55, %v910_v18 }
 0x1d9   : > { %v1311_v43 = vpop.f32.mrf.mxu1 }
 0x1da   : > { %v994_v26 = vadd.f32 %v993_v56, %v951_v23  ;;  %v1276_v40 = vpop.f32.mrf.mxu0 }
 0x1dc   : > { %v1024_v4 = vpop.f32.mrf.mxu2 }
 0x1dd   : > { %v1055_v5 = vpop.f32.mrf.mxu3  ;;  %v1025_v12 = vadd.f32 %v1024_v4, %v982_v9 }
 0x1de   : > { %v1056_v38 = vadd.f32 %v1055_v5, %v1021_v49 }
 0x1e0   : > { %1327 = vst.msk [vmem:[%s1955_s30 + $0x20] sm:$0xff] %vm1322_vm2, %v1056_v38 }
 0x1e1   : > { %v1315_v55 = vpop.f32.mrf.mxu1 }
 0x1e2   : > { %v1280_v52 = vpop.f32.mrf.mxu0 }
 0x1e4   : > { %v1028_v60 = vpop.f32.mrf.mxu2 }
 0x1e5   : > { %v1059_v13 = vpop.f32.mrf.mxu3  ;;  %v1029_v19 = vadd.f32 %v1028_v60, %v988_v16 }
 0x1e6   : > { %v1060_v14 = vadd.f32 %v1059_v13, %v1025_v12 }
 0x1e8   : > { %1328 = vst.msk [vmem:[%s1955_s30 + $0x28] sm:$0xff] %vm1322_vm2, %v1060_v14 }
 0x1e9   : > { %v1319_v31 = vpop.f32.mrf.mxu1 }
 0x1ea   : > { %v1284_v1 = vpop.f32.mrf.mxu0 }
 0x1ec   : > { %v1032_v20 = vpop.f32.mrf.mxu2 }
 0x1ed   : > { %v1063_v7 = vpop.f32.mrf.mxu3  ;;  %v1033_v27 = vadd.f32 %v1032_v20, %v994_v26 }
 0x1ee   : > { %v1064_v24 = vadd.f32 %v1063_v7, %v1029_v19 }
 0x1f0   : > { %1329 = vst.msk [vmem:[%s1955_s30 + $0x30] sm:$0xff] %vm1322_vm2, %v1064_v24 }
 0x1f4   : > { %v1187_v28 = vpop.f32.mrf.mxu2 }
 0x1f5   : > { %v1067_v29 = vpop.f32.mrf.mxu3  ;;  %v1188_v35 = vadd.f32 %v1187_v28, %v1150_v34 }
 0x1f6   : > { %v1068_v8 = vadd.f32 %v1067_v29, %v1033_v27 }
 0x1f8   : > { %1330 = vst.msk [vmem:[%s1955_s30 + $0x38] sm:$0xff] %vm1322_vm2, %v1068_v8 }
 0x1fc   : > { %v1192_v36 = vpop.f32.mrf.mxu2 }
 0x1fd   : > { %v1227_v33 = vpop.f32.mrf.mxu3  ;;  %v1193_v0 = vadd.f32 %v1192_v36, %v1154_v41 }
 0x1fe   : > { %v1228_v37 = vadd.f32 %v1227_v33, %v1188_v35 }
 0x200   : > { %v1273_v39 = vadd.f32 %v1272_v11, %v1228_v37 }
 0x202   : > { %v1308_v42 = vadd.f32 %v1307_v32, %v1273_v39 }
 0x204   : > { %1331 = vst.msk [vmem:[%s1955_s30 + $0x40] sm:$0xff] %vm1322_vm2, %v1308_v42  ;;  %v1197_v45 = vpop.f32.mrf.mxu2 }
 0x205   : > { %v1233_v2 = vpop.f32.mrf.mxu3  ;;  %v1198_v53 = vadd.f32 %v1197_v45, %v1158_v50 }
 0x206   : > { %v1234_v44 = vadd.f32 %v1233_v2, %v1193_v0 }
 0x208   : > { %v1277_v46 = vadd.f32 %v1276_v40, %v1234_v44 }
 0x20a   : > { %v1312_v51 = vadd.f32 %v1311_v43, %v1277_v46 }
 0x20c   : > { %1332 = vst.msk [vmem:[%s1955_s30 + $0x48] sm:$0xff] %vm1322_vm2, %v1312_v51  ;;  %v1202_v58 = vpop.f32.mrf.mxu2 }
 0x20d   : > { %v1239_v54 = vpop.f32.mrf.mxu3  ;;  %v1203_v62 = vadd.f32 %v1202_v58, %v1162_v59 }
 0x20e   : > { %v1240_v56 = vadd.f32 %v1239_v54, %v1198_v53 }
 0x210   : > { %v1281_v57 = vadd.f32 %v1280_v52, %v1240_v56 }
 0x212   : > { %v1316_v61 = vadd.f32 %v1315_v55, %v1281_v57 }
 0x214   : > { %1333 = vst.msk [vmem:[%s1955_s30 + $0x50] sm:$0xff] %vm1322_vm2, %v1316_v61 }
 0x215   : > { %v1245_v63 = vpop.f32.mrf.mxu3 }
 0x216   : > { %v1246_v17 = vadd.f32 %v1245_v63, %v1203_v62 }
 0x218   : > { %v1285_v47 = vadd.f32 %v1284_v1, %v1246_v17 }
 0x21a   : > { %v1320_v3 = vadd.f32 %v1319_v31, %v1285_v47 }
 0x21c   : > { %1334 = vst.msk [vmem:[%s1955_s30 + $0x58] sm:$0xff] %vm1322_vm2, %v1320_v3 }
 0x21d   : > { %1557 = shalt.err (!%p1554_p7)
}
 0x21e   : > { %s1600_s28 = smov 128   ;;  %s1601_s25 = smov 8  }
 0x21f   : > { %1452 = dma.vmem_to_hbm [thread:$0]  (%p1668_p11), %s1350_s8, 1536, %s1352_s9, %s1336_s16, %s1600_s28, %s1600_s28, %s1601_s25  }
 0x220 PF: > { %s1366_s27 = sand.u32 1, %s1584_s12   ;;  %p1459_p8 = pnand %p1427_p9, %p1672_p12 }
 0x221   : > { %s1367_s29 = scalar_lea.sflag [#allocation4], %s1366_s27 }
 0x222   : > { %p1460_p10 = pneg %p1459_p8 }
 0x224   : > { %1579 = dma.done.wait (%p1460_p10), %s1367_s29, 1536  }
 0x225   : > { %1581 = vsyncadd (%p1460_p10), %s1367_s29, 4294965760  ;;  %p16_p0 = scmp.ge.s32.totalorder %s1647_s18, 4   ;;  %s2023_s12 = smov %s1588_s13 }
 0x226   : > { %s2024_s13 = smov %s1592_s14  ;;  %s2025_s14 = smov %s1659_s21 }
 0x227   : > { %s2026_s15 = smov %s1647_s18  ;;  %18 = sbr.rel (!%p16_p0) target bundleno = 5 (0x5), region = 77 }
 0x22c   :  { %1373 = vsyncpa [#allocation3], 1 }
 0x22d   :  { %1375 = vsyncpa [#allocation3 + $0x1], 1 }
 0x22e   :  { %1376 = vsyncpa [#allocation4], 1 }
 0x22f   :  { %1378 = vsyncpa [#allocation4 + $0x1], 1 }

</bundles_post_ra>
